<compile_context>
chip_gen: v6e
topology: v6e:2x2x1
jax: 0.10.0
libtpu: 0.0.40
codegen_flags: <defaults>
</compile_context>

<pallas_src>
import math

import jax
import jax.numpy as jnp
from jax.experimental import pallas as pl
from jax.experimental.pallas import tpu as pltpu


def _round_up(x, m):
    return ((x + m - 1) // m) * m


_MIN_TILE_M = 64  # don't shrink batch tiles below this (per-step overhead dominates)


def _dynamics_kernel(s_ref, a_ref, ws_ref, wa_ref, b_ref, o_ref):
    # y = s @ Ws^T + a @ Wa^T + b  for one (tile_m, tile_n) output block.
    # Operands cast to the weight dtype (bf16 by default) on the VPU; both MXU
    # matmuls accumulate in f32; bias add is f32; only the store narrows.
    cdt = ws_ref.dtype
    y = jnp.dot(s_ref[...].astype(cdt), ws_ref[...],
                preferred_element_type=jnp.float32)
    y = y + jnp.dot(a_ref[...].astype(cdt), wa_ref[...],
                    preferred_element_type=jnp.float32)
    o_ref[...] = (y + b_ref[...]).astype(o_ref.dtype)


def prepare_params(weight, bias, *, param_dtype=jnp.bfloat16):
    """One-time layout/dtype transform of the torch-layout nn.Linear params.

    weight: (F, 2F) = (out_features, in_features); bias: (F,)
    Returns ws_t, wa_t: (F, Fp) in `param_dtype` (transposed halves of the
    weight) and bias2d: (1, Fp) float32.  The output-feature dim is lane-padded
    to a multiple of 128 ONLY when F >= 128; tiny F keeps its true width so the
    mem-bound kernel does not inflate output writeback 4x.
    """
    f_out, f2 = weight.shape
    f_in = f2 // 2
    fp = f_out if f_out < 128 else _round_up(f_out, 128)

    ws = weight[:, :f_in].T.astype(param_dtype)   # state half,  (F_in, F_out)
    wa = weight[:, f_in:].T.astype(param_dtype)   # action half, (F_in, F_out)
    b = bias.astype(jnp.float32).reshape(1, f_out)
    if fp != f_out:
        ws = jnp.zeros((f_in, fp), param_dtype).at[:, :f_out].set(ws)
        wa = jnp.zeros((f_in, fp), param_dtype).at[:, :f_out].set(wa)
        b = jnp.zeros((1, fp), jnp.float32).at[:, :f_out].set(b[0])
    return ws, wa, b


def dynamics_model_forward(state_latent, action_latent, ws_t, wa_t, bias2d,
                           out_features, *, tm=1024, out_dtype=None):
    """state_latent, action_latent: (B, F). ws_t/wa_t/bias2d from prepare_params.

    out_dtype: output dtype (defaults to the activation dtype). On v5e, pass
    jnp.bfloat16 if the consumer accepts it to halve output writeback bytes.
    """
    B, F = state_latent.shape
    Fp = ws_t.shape[1]
    out_dtype = state_latent.dtype if out_dtype is None else out_dtype
    wdt = ws_t.dtype

    # ---- output-feature (N) tiling & weight residency (matters when F scales) ----
    resident_w_bytes = 2 * F * Fp * wdt.itemsize          # both weight mats, one buffer
    single_buffer_w = resident_w_bytes > (4 << 20)        # skip double-buffering big weights
    n_bufs = 1 if single_buffer_w else 2
    tile_n = Fp
    while tile_n > 128 and n_bufs * 2 * F * tile_n * wdt.itemsize > (16 << 20):
        tile_n = max(128, _round_up(tile_n // 2, 128))
    grid_n = pl.cdiv(Fp, tile_n)

    # ---- batch (M) tiling: big tiles, no host-side padding, ragged edge masked ----
    act_bytes = state_latent.dtype.itemsize
    out_bytes = jnp.dtype(out_dtype).itemsize
    bytes_per_row = 2 * (2 * F * act_bytes + tile_n * out_bytes)   # double-buffered
    vmem_rows = max(8, ((12 << 20) // bytes_per_row) // 8 * 8)
    tile_m = min(tm, _round_up(B, 8), vmem_rows)
    # v7x megacore: keep >=2 grid steps along the parallel batch axis when B is
    # large enough that the halved tiles still amortize per-step overhead.
    while pl.cdiv(B, tile_m) < 2 and tile_m >= 2 * _MIN_TILE_M:
        tile_m = _round_up(tile_m // 2, 8)
    grid_m = pl.cdiv(B, tile_m)

    # Weights/bias are resident (constant index map along the batch axis);
    # single-buffer them only when they are big enough for it to matter, so the
    # small-F path keeps the default (validated) spec construction.
    w_kwargs = {}
    if single_buffer_w:
        w_kwargs["pipeline_mode"] = pl.Buffered(buffer_count=1)

    out = pl.pallas_call(
        _dynamics_kernel,
        out_shape=jax.ShapeDtypeStruct((B, Fp), out_dtype),
        grid=(grid_m, grid_n),
        in_specs=[
            pl.BlockSpec((tile_m, F), lambda i, n: (i, 0)),               # state tile
            pl.BlockSpec((tile_m, F), lambda i, n: (i, 0)),               # action tile
            pl.BlockSpec((F, tile_n), lambda i, n: (0, n), **w_kwargs),   # Ws^T
            pl.BlockSpec((F, tile_n), lambda i, n: (0, n), **w_kwargs),   # Wa^T
            pl.BlockSpec((1, tile_n), lambda i, n: (0, n), **w_kwargs),   # bias
        ],
        out_specs=pl.BlockSpec((tile_m, tile_n), lambda i, n: (i, n)),
        compiler_params=pltpu.CompilerParams(
            # Both axes independent -> megacore-shardable; no reduction axis.
            dimension_semantics=("parallel", "parallel"),
            vmem_limit_bytes=32 * 1024 * 1024,
        ),
    )(state_latent, action_latent, ws_t, wa_t, bias2d)

    # Column slice only taken when F >= 128 and not already a multiple of 128.
    if Fp != out_features:
        out = out[:, :out_features]
    return out


def init_params(key, feature_size):
    """Deterministic init matching weights_init_: xavier_uniform(gain=1) weight, zero bias."""
    fan_in = 2 * feature_size
    fan_out = feature_size
    limit = math.sqrt(6.0 / (fan_in + fan_out))
    weight = jax.random.uniform(
        key, (fan_out, fan_in), minval=-limit, maxval=limit, dtype=jnp.float32
    )  # torch nn.Linear weight layout: (out_features, in_features)
    bias = jnp.zeros((fan_out,), dtype=jnp.float32)
    return weight, bias


if __name__ == "__main__":
    key = jax.random.PRNGKey(0)
    k_s, k_a, k_w, k_s2, k_a2 = jax.random.split(key, 5)

    batch = 8
    feature_size = 32

    state_latent = jax.random.normal(k_s, (batch, feature_size), dtype=jnp.float32)
    action_latent = jax.random.normal(k_a, (batch, feature_size), dtype=jnp.float32)
    weight, bias = init_params(k_w, feature_size)

    def reference(s, a):
        x = jnp.concatenate([s, a], axis=1)
        return x @ weight.T + bias

    # (1) f32 params: checks the split-matmul / no-concat formulation exactly.
    ws32, wa32, b32 = prepare_params(weight, bias, param_dtype=jnp.float32)
    out32 = jax.block_until_ready(
        dynamics_model_forward(state_latent, action_latent, ws32, wa32, b32, feature_size))
    assert out32.shape == (batch, feature_size)
    assert jnp.allclose(out32, reference(state_latent, action_latent), atol=1e-5), \
        "f32 path mismatch vs reference"

    # (2) bf16 params (perf-default path): tight check vs a bf16-rounded
    #     reference, loose check vs the exact f32 reference.
    wsb, wab, bb = prepare_params(weight, bias)  # bf16 weights, f32 bias
    outb = jax.block_until_ready(
        dynamics_model_forward(state_latent, action_latent, wsb, wab, bb, feature_size))
    ref_b = (state_latent.astype(jnp.bfloat16).astype(jnp.float32) @ wsb.astype(jnp.float32)
             + action_latent.astype(jnp.bfloat16).astype(jnp.float32) @ wab.astype(jnp.float32)
             + bb)
    assert outb.shape == (batch, feature_size)
    assert jnp.allclose(outb, ref_b, atol=1e-4), "bf16 path mismatch vs bf16 reference"
    assert jnp.allclose(outb, reference(state_latent, action_latent), atol=5e-2), \
        "bf16 path drifted from f32 reference"

    # (3) Ragged batch (no wrapper padding, cdiv grid, >=2 batch grid steps).
    batch2 = 200
    s2 = jax.random.normal(k_s2, (batch2, feature_size), dtype=jnp.float32)
    a2 = jax.random.normal(k_a2, (batch2, feature_size), dtype=jnp.float32)
    out2 = jax.block_until_ready(
        dynamics_model_forward(s2, a2, ws32, wa32, b32, feature_size))
    assert out2.shape == (batch2, feature_size)
    assert jnp.allclose(out2, jnp.concatenate([s2, a2], axis=1) @ weight.T + bias,
                        atol=1e-5), "ragged-batch mismatch vs reference"

    print("KERNEL_OK")
</pallas_src>

<mosaic_0001>
module attributes {stable_mosaic.version = 11 : i64} {
  func.func @_dynamics_kernel(%arg0: i32, %arg1: i32, %arg2: memref<8x32xf32, #tpu.memory_space<vmem>>, %arg3: memref<8x32xf32, #tpu.memory_space<vmem>>, %arg4: memref<32x32xf32, #tpu.memory_space<vmem>>, %arg5: memref<32x32xf32, #tpu.memory_space<vmem>>, %arg6: memref<1x32xf32, #tpu.memory_space<vmem>>, %arg7: memref<8x32xf32, #tpu.memory_space<vmem>>) attributes {dimension_semantics = [#tpu.dimension_semantics<parallel>, #tpu.dimension_semantics<parallel>], iteration_bounds = array<i64: 1, 1>, scalar_prefetch = 0 : i64, scratch_operands = 0 : i64, tpu.core_type = #tpu.core_type<tc>, window_params = [{transform_indices = @transform_0, window_bounds = array<i64: 8, 32>}, {transform_indices = @transform_1, window_bounds = array<i64: 8, 32>}, {transform_indices = @transform_2, window_bounds = array<i64: 32, 32>}, {transform_indices = @transform_3, window_bounds = array<i64: 32, 32>}, {transform_indices = @transform_4, window_bounds = array<i64: 1, 32>}, {transform_indices = @transform_5, window_bounds = array<i64: 8, 32>}]} {
    %c0 = arith.constant 0 : index
    %c0_0 = arith.constant 0 : index
    %0 = vector.load %arg2[%c0, %c0_0] : memref<8x32xf32, #tpu.memory_space<vmem>>, vector<8x32xf32>
    %c0_1 = arith.constant 0 : index
    %c0_2 = arith.constant 0 : index
    %1 = vector.load %arg4[%c0_1, %c0_2] : memref<32x32xf32, #tpu.memory_space<vmem>>, vector<32x32xf32>
    %cst = arith.constant dense<0.000000e+00> : vector<8x32xf32>
    %2 = tpu.matmul %0, %1, %cst {dimension_numbers = #tpu.dot_dimension_numbers<[1], [0], [0], [1], [0, 0, 1, 1], [], []>} : vector<8x32xf32>, vector<32x32xf32>, vector<8x32xf32> -> vector<8x32xf32>
    %c0_3 = arith.constant 0 : index
    %c0_4 = arith.constant 0 : index
    %3 = vector.load %arg3[%c0_3, %c0_4] : memref<8x32xf32, #tpu.memory_space<vmem>>, vector<8x32xf32>
    %c0_5 = arith.constant 0 : index
    %c0_6 = arith.constant 0 : index
    %4 = vector.load %arg5[%c0_5, %c0_6] : memref<32x32xf32, #tpu.memory_space<vmem>>, vector<32x32xf32>
    %cst_7 = arith.constant dense<0.000000e+00> : vector<8x32xf32>
    %5 = tpu.matmul %3, %4, %cst_7 {dimension_numbers = #tpu.dot_dimension_numbers<[1], [0], [0], [1], [0, 0, 1, 1], [], []>} : vector<8x32xf32>, vector<32x32xf32>, vector<8x32xf32> -> vector<8x32xf32>
    %6 = arith.addf %2, %5 : vector<8x32xf32>
    %c0_8 = arith.constant 0 : index
    %c0_9 = arith.constant 0 : index
    %7 = vector.load %arg6[%c0_8, %c0_9] : memref<1x32xf32, #tpu.memory_space<vmem>>, vector<1x32xf32>
    %8 = vector.broadcast %7 : vector<1x32xf32> to vector<8x32xf32>
    %9 = arith.addf %6, %8 : vector<8x32xf32>
    %c0_10 = arith.constant 0 : index
    %c0_11 = arith.constant 0 : index
    %10 = vector.load %arg7[%c0_10, %c0_11] : memref<8x32xf32, #tpu.memory_space<vmem>>, vector<8x32xf32>
    tpu.vector_store %arg7[%c0_10, %c0_11], %9 {strides = array<i32>} : memref<8x32xf32, #tpu.memory_space<vmem>>, vector<8x32xf32>,
    return
  }
  func.func @transform_0(%arg0: i32, %arg1: i32) -> (i32, i32) {
    %c0_i32 = arith.constant 0 : i32
    %c0_i32_0 = arith.constant 0 : i32
    return %arg0, %c0_i32 : i32, i32
  }
  func.func @transform_1(%arg0: i32, %arg1: i32) -> (i32, i32) {
    %c0_i32 = arith.constant 0 : i32
    %c0_i32_0 = arith.constant 0 : i32
    return %arg0, %c0_i32 : i32, i32
  }
  func.func @transform_2(%arg0: i32, %arg1: i32) -> (i32, i32) {
    %c0_i32 = arith.constant 0 : i32
    %c0_i32_0 = arith.constant 0 : i32
    return %c0_i32, %arg1 : i32, i32
  }
  func.func @transform_3(%arg0: i32, %arg1: i32) -> (i32, i32) {
    %c0_i32 = arith.constant 0 : i32
    %c0_i32_0 = arith.constant 0 : i32
    return %c0_i32, %arg1 : i32, i32
  }
  func.func @transform_4(%arg0: i32, %arg1: i32) -> (i32, i32) {
    %c0_i32 = arith.constant 0 : i32
    %c0_i32_0 = arith.constant 0 : i32
    return %c0_i32, %arg1 : i32, i32
  }
  func.func @transform_5(%arg0: i32, %arg1: i32) -> (i32, i32) {
    %c0_i32 = arith.constant 0 : i32
    return %arg0, %arg1 : i32, i32
  }
}

</mosaic_0001>

<bundles_post_ra>
// kernel: tpu_custom_call.1
= control target key start
LH: loop header
LB: loop body
LE: loop exit
PB: predicated region body
PF: predicated region fallthrough
CT: control target
= control target key end

     0   :  { %10 = vsyncpa [#allocation3], 0  ;;  %s467_s0 = inlined_call_operand.hbm [shape: f32[8,32], index: 0, kind: input, shape index: {}]   ;;  %s468_s1 = inlined_call_operand.hbm [shape: f32[8,32], index: 1, kind: input, shape index: {}]   ;;  %s469_s2 = inlined_call_operand.hbm [shape: f32[32,32], index: 2, kind: input, shape index: {}]   ;;  %s470_s3 = inlined_call_operand.hbm [shape: f32[32,32], index: 3, kind: input, shape index: {}]   ;;  %s471_s4 = inlined_call_operand.vmem [shape: f32[1,32], index: 4, kind: input, shape index: {}]   ;;  %s472_s5 = inlined_call_operand.hbm [shape: f32[8,32], index: 5, kind: output, shape index: {}]  }
   0x1   :  { %11 = vsyncpa [#allocation6], 0 }
   0x2   :  { %12 = vsyncpa [#allocation9], 0 }
   0x3   :  { %13 = vsyncpa [#allocation4], 0  ;;  %s407_s18 = smov [#allocation5]   ;;  %s408_s20 = smov [#allocation2]  }
   0x4   :  { %s30_s19 = sshll.u32 %s407_s18, 4  ;;  %s20_s21 = sshll.u32 %s408_s20, 4  ;;  %s31_s19 = int_to_ptr.vmem [resolvable:$true] %s30_s19  ;;  %s21_s21 = int_to_ptr.vmem [resolvable:$true] %s20_s21 }
   0x5   :  { %s307_s22 = scalar_lea.vmem %s31_s19, 128  ;;  %p312_p1 = scmp.lt.s32.totalorder %s31_s19, %s31_s19 }
   0x6   :  { %p308_p0 = scmp.ne.s32.totalorder %s31_s19, %s307_s22  ;;  %p313_p2 = scmp.lt.s32.totalorder %s307_s22, %s307_s22 }
   0x8   :  { %p314_p3 = por %p313_p2, %p312_p1 }
   0xa   :  { %p315_p4 = pnand %p314_p3, %p308_p0 }
   0xc   :  { %318 = shalt.err (!%p315_p4)
}
   0xd   :  { %33 = dma.hbm_to_vmem [thread:$0]  %s468_s1, 128, %s31_s19, [#allocation6]  }
   0xe   :  { %s327_s25 = scalar_lea.vmem %s21_s21, 128  ;;  %p332_p6 = scmp.lt.s32.totalorder %s21_s21, %s21_s21 }
   0xf   :  { %p328_p5 = scmp.ne.s32.totalorder %s21_s21, %s327_s25  ;;  %p333_p7 = scmp.lt.s32.totalorder %s327_s25, %s327_s25 }
  0x11   :  { %p334_p8 = por %p333_p7, %p332_p6 }
  0x13   :  { %p335_p9 = pnand %p334_p8, %p328_p5 }
  0x15   :  { %338 = shalt.err (!%p335_p9)
}
  0x16   :  { %23 = dma.hbm_to_vmem [thread:$0]  %s467_s0, 128, %s21_s21, [#allocation3]  }
  0x17   :  { %s409_s28 = smov [#allocation7]  }
  0x18   :  { %s39_s29 = sshll.u32 %s409_s28, 4  ;;  %s40_s29 = int_to_ptr.vmem [resolvable:$true] %s39_s29 }
  0x19   :  { %s347_s30 = scalar_lea.vmem %s40_s29, 512  ;;  %p352_p11 = scmp.lt.s32.totalorder %s40_s29, %s40_s29 }
  0x1a   :  { %p348_p10 = scmp.ne.s32.totalorder %s40_s29, %s347_s30  ;;  %p353_p12 = scmp.lt.s32.totalorder %s347_s30, %s347_s30 }
  0x1c   :  { %p354_p13 = por %p353_p12, %p352_p11 }
  0x1e   :  { %p355_p0 = pnand %p354_p13, %p348_p10 }
  0x20   :  { %358 = shalt.err (!%p355_p0)
}
  0x21   :  { %s410_s1 = smov 128   ;;  %s411_s6 = smov 8  }
  0x22   :  { %45 = dma.hbm_to_vmem [thread:$0]  %s469_s2, 512, %s40_s29, [#allocation6], %s410_s1, %s410_s1, %s411_s6  }
  0x23   :  { %s412_s9 = smov [#allocation8]  }
  0x24   :  { %s51_s10 = sshll.u32 %s412_s9, 4  ;;  %s52_s10 = int_to_ptr.vmem [resolvable:$true] %s51_s10 }
  0x25   :  { %s367_s0 = scalar_lea.vmem %s52_s10, 512  ;;  %p372_p2 = scmp.lt.s32.totalorder %s52_s10, %s52_s10 }
  0x26   :  { %p368_p1 = scmp.ne.s32.totalorder %s52_s10, %s367_s0  ;;  %p373_p3 = scmp.lt.s32.totalorder %s367_s0, %s367_s0 }
  0x28   :  { %p374_p4 = por %p373_p3, %p372_p2 }
  0x2a   :  { %p375_p5 = pnand %p374_p4, %p368_p1 }
  0x2c   :  { %378 = shalt.err (!%p375_p5)
}
  0x2d   :  { %57 = dma.hbm_to_vmem [thread:$0]  %s470_s3, 512, %s52_s10, [#allocation9], %s410_s1, %s410_s1, %s411_s6  }
  0x2e   :  { %399 = dma.done.wait [#allocation3], 128  }
  0x2f   :  { %400 = vsyncadd [#allocation3], 4294967168 }
  0x30   :  { %401 = dma.done.wait [#allocation6], 640  }
  0x31   :  { %402 = vsyncadd [#allocation6], 4294966656 }
  0x32   :  { %403 = dma.done.wait [#allocation9], 512  }
  0x33   :  { %404 = vsyncadd [#allocation9], 4294966784  ;;  %v413_v0 = vmov 0.0   ;;  %vm414_vm0 = vmmov 0   ;;  %v81_v1 = vld [vmem:[#allocation8 + $0x18] sm:$0xff]  ;;  %v80_v3 = vld [vmem:[#allocation8 + $0x10] sm:$0xff] }
  0x34   :  { %268 = vmatprep.subr.mxu0 %v413_v0  ;;  %279 = vmatprep.subr.mxu1 %v413_v0  ;;  %v76_v2 = vld [vmem:[#allocation7 + $0x18] sm:$0xff]  ;;  %v75_v4 = vld [vmem:[#allocation7 + $0x10] sm:$0xff]  ;;  %v79_v5 = vld [vmem:[#allocation8 + $0x8] sm:$0xff]  ;;  %vm82_vm1 = vcmask 261120   ;;  %s415_s13 = smov [#allocation10]  }
  0x35   :  { %276 = vmatprep.mubr.msk.f32.mxu0 %vm414_vm0, %v413_v0  ;;  %287 = vmatprep.mubr.msk.f32.mxu1 %vm414_vm0, %v413_v0  ;;  %v74_v6 = vld [vmem:[#allocation7 + $0x8] sm:$0xff]  ;;  %v78_v7 = vld [vmem:[#allocation8] sm:$0xff]  ;;  %v77_v9 = vld [vmem:[#allocation5] sm:$0xff]  ;;  %s244_s14 = sshll.u32 %s415_s13, 4  ;;  %s245_s14 = int_to_ptr.vmem [resolvable:$true] %s244_s14 }
  0x36   :  { %269 = vmatpush3.msra.mxu0 %v81_v1  ;;  %280 = vmatpush3.msra.mxu1 %v76_v2  ;;  %v73_v8 = vld [vmem:[#allocation7] sm:$0xff]  ;;  %v72_v10 = vld [vmem:[#allocation2] sm:$0xff]  ;;  %s379_s15 = scalar_lea.vmem %s245_s14, 128  ;;  %p384_p7 = scmp.lt.s32.totalorder %s245_s14, %s245_s14 }
  0x37   :  { %270 = vmatprep.subr.mxu0 %v413_v0  ;;  %281 = vmatprep.subr.mxu1 %v413_v0  ;;  %v257_v13 = vld [vmem:[%s471_s4] ss:$0 sm:$0xff]  ;;  %p380_p6 = scmp.ne.s32.totalorder %s245_s14, %s379_s15  ;;  %p385_p8 = scmp.lt.s32.totalorder %s379_s15, %s379_s15 }
  0x38   :  { %271 = vmatpush3.msra.mxu0 %v80_v3  ;;  %282 = vmatpush3.msra.mxu1 %v75_v4 }
  0x39   :  { %272 = vmatprep.subr.mxu0 %v413_v0  ;;  %283 = vmatprep.subr.mxu1 %v413_v0  ;;  %p386_p9 = por %p385_p8, %p384_p7 }
  0x3a   :  { %273 = vmatpush3.msra.mxu0 %v79_v5  ;;  %284 = vmatpush3.msra.mxu1 %v74_v6 }
  0x3b   :  { %274 = vmatprep.subr.mxu0 %v413_v0  ;;  %285 = vmatprep.subr.mxu1 %v413_v0  ;;  %p387_p10 = pnand %p386_p9, %p380_p6 }
  0x3c   :  { %275 = vmatpush3.msra.mxu0 %v78_v7  ;;  %286 = vmatpush3.msra.mxu1 %v73_v8 }
  0x3d   :  { %277 = vmatmul.mubr.msk.f32.vlgmr.msra.gmra.mxu0 %vm82_vm1, %v77_v9  ;;  %288 = vmatmul.mubr.msk.f32.vlgmr.msra.gmra.mxu1 %vm82_vm1, %v72_v10 }
  0xfd   :  { %v152_v11 = vpop.f32.mrf.mxu0  ;;  %v225_v12 = vpop.f32.mrf.mxu1 }
  0xfe   :  { %v226_v14 = vadd.f32 %v225_v12, %v152_v11 }
  0xff   :  { %v278_v15 = vpop.f32.mrf.mxu0  ;;  %v289_v16 = vpop.f32.mrf.mxu1 }
 0x100   :  { %v236_v17 = vadd.f32 %v257_v13, %v226_v14 }
 0x102   :  { %237 = vst.msk [vmem:[#allocation10] sm:$0xff] %vm82_vm1, %v236_v17 }
 0x103   :  { %390 = shalt.err (!%p387_p10)
}
 0x104   :  { %247 = dma.vmem_to_hbm [thread:$0]  %s245_s14, 128, %s472_s5, [#allocation4]  }
 0x105   :  { %405 = dma.done.wait [#allocation4], 128  }
 0x106   :  { %406 = vsyncadd [#allocation4], 4294967168 }
 0x107   :  { %251 = vsyncpa [#allocation3], 1 }
 0x108   :  { %252 = vsyncpa [#allocation6], 1 }
 0x109   :  { %253 = vsyncpa [#allocation9], 1 }
 0x10a   :  { %254 = vsyncpa [#allocation4], 1 }

</bundles_post_ra>
